<compile_context>
chip_gen: v5e
topology: v5e:2x2
jax: 0.10.0
libtpu: 0.0.40
codegen_flags: <defaults>
</compile_context>

<pallas_src>
import functools

import numpy as np
import jax
import jax.numpy as jnp
from jax.experimental import pallas as pl
from jax.experimental.pallas import tpu as pltpu


_LANE = 128


# ---------------------------------------------------------------------------
# Host-side constant-operator builders (tiny numpy matrices).
# ---------------------------------------------------------------------------
def _moving_avg_matrix(T, k):
    """(T,T) operator: (A @ x)[t] = mean of edge-padded x over a length-k window."""
    pf = (k - 1) // 2
    A = np.zeros((T, T), np.float32)
    for t in range(T):
        for u in range(k):
            src = min(max(t + u - pf, 0), T - 1)
            A[t, src] += 1.0 / k
    return A


def _dft_matrices(T):
    """Real-DFT bases for FourierLayer candidate frequencies (DC/Nyquist excluded).

    Rows padded with zeros up to a multiple of 8 (sublane-aligned).  Padded rows have
    zero amplitude and are explicitly excluded from the top-k selection in-kernel.
    Returns (cos_m, sin_m, F_real), cos_m/sin_m of shape (F_pad, T).
    """
    n_rfft = T // 2 + 1
    hi = n_rfft - 1 if T % 2 == 0 else n_rfft
    fidx = np.arange(1, hi)
    F = fidx.shape[0]
    F_pad = max(8, int(np.ceil(F / 8)) * 8)
    tt = np.arange(T)
    ang = 2.0 * np.pi * fidx[:, None] * tt[None, :] / T            # (F, T)
    cos_m = np.zeros((F_pad, T), np.float32)
    sin_m = np.zeros((F_pad, T), np.float32)
    cos_m[:F] = np.cos(ang)
    sin_m[:F] = np.sin(ang)
    return cos_m, sin_m, F


def _build_dynamic_operators(T, kernel_size):
    """Fused analysis operator A (M_pad, T) = [MA_1; ...; MA_K; cos; -sin; 0-pad] and
    pre-scaled synthesis operator S (T, 2*F_pad) = (2/T) * [cos.T | -sin.T]."""
    K = len(kernel_size)
    cos_m, sin_m, F_real = _dft_matrices(T)
    F_pad = cos_m.shape[0]
    M_total = K * T + 2 * F_pad
    M_pad = int(np.ceil(M_total / 8)) * 8
    A = np.zeros((M_pad, T), np.float32)
    for j, k in enumerate(kernel_size):
        A[j * T:(j + 1) * T] = _moving_avg_matrix(T, k)
    A[K * T:K * T + F_pad] = cos_m
    A[K * T + F_pad:K * T + 2 * F_pad] = -sin_m
    S = (2.0 / T) * np.concatenate([cos_m.T, -sin_m.T], axis=1).astype(np.float32)
    return A, S.astype(np.float32), F_real, F_pad


# ---------------------------------------------------------------------------
# Kernels
# ---------------------------------------------------------------------------
def _dynamic_kernel(lin_w_ref, lin_b_ref, x_ref, a_ref, s_ref,
                    seas_ref, trend_ref, *, topk, n_ma, t_len, f_real, f_pad):
    x = x_ref[...]                                                  # (T, tn), lane-dense

    # ---- single fused analysis matmul: [K moving averages ; Re(DFT) ; Im(DFT)] -------
    P = jnp.dot(a_ref[...], x, preferred_element_type=jnp.float32)  # (M_pad, tn)
    off = n_ma * t_len
    x_re = P[off: off + f_pad]                                      # (F_pad, tn)
    x_im = P[off + f_pad: off + 2 * f_pad]                          # (F_pad, tn)

    # ---- trend: series_decomp_multi (softmax-weighted multi-scale moving average) ----
    logits = [lin_w_ref[j] * x + lin_b_ref[j] for j in range(n_ma)]
    m = logits[0]
    for j in range(1, n_ma):
        m = jnp.maximum(m, logits[j])
    exps = [jnp.exp(l - m) for l in logits]
    denom = exps[0]
    for j in range(1, n_ma):
        denom = denom + exps[j]
    inv = pl.reciprocal(denom, approx=True)                         # EUP, hoisted once
    trend = jnp.zeros_like(x)
    for j in range(n_ma):
        trend = trend + P[j * t_len:(j + 1) * t_len] * (exps[j] * inv)
    trend_ref[...] = trend.astype(trend_ref.dtype)

    # ---- seasonality: FourierLayer(pred_len=0, k=topk) -------------------------------
    amp2 = x_re * x_re + x_im * x_im                                # (F_pad, tn)
    row_idx = jax.lax.broadcasted_iota(jnp.int32, (f_pad, amp2.shape[1]), 0)
    beats = jnp.zeros_like(amp2)
    for g in range(f_real):                                         # genuine freqs only
        ag = amp2[g:g + 1]                                          # broadcast over rows
        ahead = (ag > amp2) | ((ag == amp2) & (row_idx > g))        # lower index wins tie
        beats = beats + ahead.astype(jnp.float32)
    mask = ((beats < float(topk)) & (row_idx < f_real)).astype(jnp.float32)

    # single fused synthesis matmul: seas = (2/T)*(cos.T @ Re_sel - sin.T @ Im_sel)
    sel = jnp.concatenate([x_re * mask, x_im * mask], axis=0)       # (2*F_pad, tn)
    seas = jnp.dot(s_ref[...], sel, preferred_element_type=jnp.float32)
    seas_ref[...] = seas.astype(seas_ref.dtype)


def _static_kernel(x_ref, a_ref, seas_ref, trend_ref):
    x = x_ref[...]                                                  # (T, tn)
    trend = jnp.dot(a_ref[...], x, preferred_element_type=jnp.float32)
    trend_ref[...] = trend.astype(trend_ref.dtype)
    seas_ref[...] = (x - trend).astype(seas_ref.dtype)


# ---------------------------------------------------------------------------
# Wrappers (layout + pallas_call plumbing)
# ---------------------------------------------------------------------------
def _prep_lane_dense(data):
    """(B, N, T) -> (T, B*N_pad): time on sublanes, batch*node lane-dense (pad to 128)."""
    data = jnp.asarray(data, jnp.float32)
    B, N, T = data.shape
    n_pad = (-N) % _LANE
    x = jnp.transpose(data, (2, 0, 1))                              # (T, B, N)
    if n_pad:
        x = jnp.pad(x, ((0, 0), (0, 0), (0, n_pad)))
    Np = N + n_pad
    return x.reshape(T, B * Np), B, N, Np, T, B * Np


def _choose_tile(W):
    """Lane-tile width: wide tiles (fewer grid steps), but keep >=2 tiles when possible
    so v7x's two TensorCores both get work on the parallel grid axis."""
    for tn in (512, 256, 128):
        if W % tn == 0 and W // tn >= 2:
            return tn
    for tn in (512, 256, 128):
        if W % tn == 0:
            return tn
    return _LANE


def _unfold(y, B, N, Np, T):
    """(T, B*Np) -> (B, T, N)."""
    return jnp.transpose(y.reshape(T, B, Np), (1, 0, 2))[:, :, :N]


def dynamic_decompose(data, lin_w, lin_b, kernel_size=(4, 8, 12), topk=3):
    x, B, N, Np, T, W = _prep_lane_dense(data)
    A, S, F_real, F_pad = _build_dynamic_operators(T, kernel_size)
    if F_real < topk:
        raise ValueError(f"timesteps={T} gives only {F_real} candidate freqs < k={topk}")
    K = len(kernel_size)
    tn = _choose_tile(W)

    kernel = functools.partial(_dynamic_kernel, topk=topk, n_ma=K, t_len=T,
                               f_real=F_real, f_pad=F_pad)
    seas, trend = pl.pallas_call(
        kernel,
        out_shape=(jax.ShapeDtypeStruct((T, W), jnp.float32),
                   jax.ShapeDtypeStruct((T, W), jnp.float32)),
        grid=(W // tn,),
        in_specs=[
            pl.BlockSpec(memory_space=pltpu.MemorySpace.SMEM),      # Linear weight (K,)
            pl.BlockSpec(memory_space=pltpu.MemorySpace.SMEM),      # Linear bias   (K,)
            pl.BlockSpec((T, tn), lambda j: (0, j)),                # x lane tile
            pl.BlockSpec(A.shape, lambda j: (0, 0)),                # fused analysis op
            pl.BlockSpec(S.shape, lambda j: (0, 0)),                # fused synthesis op
        ],
        out_specs=(pl.BlockSpec((T, tn), lambda j: (0, j)),
                   pl.BlockSpec((T, tn), lambda j: (0, j))),
        compiler_params=pltpu.CompilerParams(dimension_semantics=("parallel",)),
    )(jnp.asarray(lin_w, jnp.float32), jnp.asarray(lin_b, jnp.float32),
      x, jnp.asarray(A), jnp.asarray(S))
    return _unfold(seas, B, N, Np, T), _unfold(trend, B, N, Np, T)


def static_decompose(data, moving_avg=25):
    x, B, N, Np, T, W = _prep_lane_dense(data)
    A = _moving_avg_matrix(T, moving_avg)
    tn = _choose_tile(W)
    seas, trend = pl.pallas_call(
        _static_kernel,
        out_shape=(jax.ShapeDtypeStruct((T, W), jnp.float32),
                   jax.ShapeDtypeStruct((T, W), jnp.float32)),
        grid=(W // tn,),
        in_specs=[pl.BlockSpec((T, tn), lambda j: (0, j)),
                  pl.BlockSpec(A.shape, lambda j: (0, 0))],
        out_specs=(pl.BlockSpec((T, tn), lambda j: (0, j)),
                   pl.BlockSpec((T, tn), lambda j: (0, j))),
        compiler_params=pltpu.CompilerParams(dimension_semantics=("parallel",)),
    )(x, jnp.asarray(A))
    return _unfold(seas, B, N, Np, T), _unfold(trend, B, N, Np, T)


class SeasonalityAndTrendDecompose:
    """JAX/Pallas port of epilearn.utils.transforms.seasonality_and_trend_decompose."""

    def __init__(self, decompose_type="dynamic", moving_avg=25, kernel_size=(4, 8, 12),
                 fourier_k=3, key=None):
        self.decompose_type = decompose_type
        self.moving_avg = moving_avg
        self.kernel_size = tuple(kernel_size)
        self.fourier_k = fourier_k
        if decompose_type == "dynamic":
            # series_decomp_multi owns a learnable nn.Linear(1, len(kernel_size)).
            # TODO(synk): torch's default random init is replicated with jax.random
            #             (deterministic), not bit-identical to torch's RNG stream.
            key = jax.random.PRNGKey(0) if key is None else key
            kw, kb = jax.random.split(key)
            n = len(self.kernel_size)
            self.lin_w = jax.random.uniform(kw, (n,), jnp.float32, -1.0, 1.0)
            self.lin_b = jax.random.uniform(kb, (n,), jnp.float32, -1.0, 1.0)

    def __call__(self, data):
        """data: (num_graphs, num_nodes, timesteps) -> [seasonality, trend],
        each (num_graphs, timesteps, num_nodes), like the torch module."""
        if self.decompose_type == "dynamic":
            seas, trend = dynamic_decompose(data, self.lin_w, self.lin_b,
                                            self.kernel_size, self.fourier_k)
        elif self.decompose_type == "static":
            seas, trend = static_decompose(data, self.moving_avg)
        else:
            raise ValueError(f"unknown decompose_type: {self.decompose_type}")
        return [seas, trend]


# ---------------------------------------------------------------------------
# Pure-numpy float64 references (independent of the kernel path).
# ---------------------------------------------------------------------------
def _np_softmax(z, axis):
    z = z - z.max(axis=axis, keepdims=True)
    e = np.exp(z)
    return e / e.sum(axis=axis, keepdims=True)


def _np_moving_avg(x, k):
    pf = (k - 1) // 2
    pe = k - 1 - pf
    xpad = np.concatenate([np.repeat(x[:, :1], pf, axis=1), x,
                           np.repeat(x[:, -1:], pe, axis=1)], axis=1)
    T = x.shape[1]
    return np.stack([xpad[:, t:t + k].mean(axis=1) for t in range(T)], axis=1)


def _reference_dynamic(data, lin_w, lin_b, kernel_sizes, k):
    x = np.transpose(data, (0, 2, 1)).astype(np.float64)     # (B, T, N)
    B, T, N = x.shape
    mas = np.stack([_np_moving_avg(x, ks) for ks in kernel_sizes], axis=-1)
    w = _np_softmax(x[..., None] * lin_w + lin_b, axis=-1)
    trend = (mas * w).sum(-1)

    xf = np.fft.rfft(x, axis=1)
    if T % 2 == 0:
        xf, freqs = xf[:, 1:-1], np.fft.rfftfreq(T)[1:-1]
    else:
        xf, freqs = xf[:, 1:], np.fft.rfftfreq(T)[1:]
    tt = np.arange(T, dtype=np.float64)
    seas = np.zeros((B, T, N))
    for b in range(B):
        for n in range(N):
            col = xf[b, :, n]
            for f in np.argsort(-np.abs(col))[:k]:
                amp, ph = np.abs(col[f]) / T, np.angle(col[f])
                seas[b, :, n] += 2.0 * amp * np.cos(2 * np.pi * freqs[f] * tt + ph)
    return seas, trend


def _reference_static(data, k):
    x = np.transpose(data, (0, 2, 1)).astype(np.float64)
    trend = _np_moving_avg(x, k)
    return x - trend, trend


if __name__ == "__main__":
    B, N, T = 2, 128, 16          # (num_graphs, num_nodes, timesteps)
    key = jax.random.PRNGKey(0)
    k_data, k_params = jax.random.split(key)
    data = jax.random.normal(k_data, (B, N, T), dtype=jnp.float32)

    # ---- dynamic decomposition (module default) ----
    module = SeasonalityAndTrendDecompose("dynamic", kernel_size=[4, 8, 12], key=k_params)
    seasonality, trend = module(data)
    seasonality = jax.block_until_ready(seasonality)
    trend = jax.block_until_ready(trend)

    ref_seas, ref_trend = _reference_dynamic(
        np.asarray(data, np.float64), np.asarray(module.lin_w, np.float64),
        np.asarray(module.lin_b, np.float64), module.kernel_size, module.fourier_k)
    np.testing.assert_allclose(np.asarray(trend, np.float64), ref_trend, rtol=2e-3, atol=2e-3)
    np.testing.assert_allclose(np.asarray(seasonality, np.float64), ref_seas, rtol=2e-3, atol=2e-3)

    # ---- static decomposition (moving-average) ----
    module_s = SeasonalityAndTrendDecompose("static", moving_avg=25)
    seas_s, trend_s = module_s(data)
    seas_s = jax.block_until_ready(seas_s)
    trend_s = jax.block_until_ready(trend_s)
    ref_seas_s, ref_trend_s = _reference_static(np.asarray(data, np.float64), 25)
    np.testing.assert_allclose(np.asarray(trend_s, np.float64), ref_trend_s, rtol=1e-3, atol=1e-3)
    np.testing.assert_allclose(np.asarray(seas_s, np.float64), ref_seas_s, rtol=1e-3, atol=1e-3)

    print("KERNEL_OK")
</pallas_src>

<mosaic_0001>
module attributes {stable_mosaic.version = 11 : i64} {
  func.func @_dynamic_kernel(%arg0: i32, %arg1: memref<3xf32, #tpu.memory_space<smem>>, %arg2: memref<3xf32, #tpu.memory_space<smem>>, %arg3: memref<16x128xf32, #tpu.memory_space<vmem>>, %arg4: memref<64x16xf32, #tpu.memory_space<vmem>>, %arg5: memref<16x16xf32, #tpu.memory_space<vmem>>, %arg6: memref<16x128xf32, #tpu.memory_space<vmem>>, %arg7: memref<16x128xf32, #tpu.memory_space<vmem>>) attributes {dimension_semantics = [#tpu.dimension_semantics<parallel>], iteration_bounds = array<i64: 2>, scalar_prefetch = 0 : i64, scratch_operands = 0 : i64, tpu.core_type = #tpu.core_type<tc>, window_params = [{transform_indices = @transform_0, window_bounds = array<i64: 3>}, {transform_indices = @transform_1, window_bounds = array<i64: 3>}, {transform_indices = @transform_2, window_bounds = array<i64: 16, 128>}, {pipeline_mode = #tpu.pipeline_mode<synchronous>, transform_indices = @transform_3, window_bounds = array<i64: 64, 16>}, {pipeline_mode = #tpu.pipeline_mode<synchronous>, transform_indices = @transform_4, window_bounds = array<i64: 16, 16>}, {transform_indices = @transform_5, window_bounds = array<i64: 16, 128>}, {transform_indices = @transform_6, window_bounds = array<i64: 16, 128>}]} {
    %c0 = arith.constant 0 : index
    %c0_0 = arith.constant 0 : index
    %0 = vector.load %arg3[%c0, %c0_0] : memref<16x128xf32, #tpu.memory_space<vmem>>, vector<16x128xf32>
    %c0_1 = arith.constant 0 : index
    %c0_2 = arith.constant 0 : index
    %1 = vector.load %arg4[%c0_1, %c0_2] : memref<64x16xf32, #tpu.memory_space<vmem>>, vector<64x16xf32>
    %cst = arith.constant dense<0.000000e+00> : vector<64x128xf32>
    %2 = tpu.matmul %1, %0, %cst {dimension_numbers = #tpu.dot_dimension_numbers<[1], [0], [0], [1], [0, 0, 1, 1], [], []>} : vector<64x16xf32>, vector<16x128xf32>, vector<64x128xf32> -> vector<64x128xf32>
    %3 = vector.extract_strided_slice %2 {offsets = [48, 0], sizes = [8, 128], strides = [1, 1]} : vector<64x128xf32> to vector<8x128xf32>
    %4 = vector.extract_strided_slice %2 {offsets = [56, 0], sizes = [8, 128], strides = [1, 1]} : vector<64x128xf32> to vector<8x128xf32>
    %c0_3 = arith.constant 0 : index
    %5 = memref.load %arg1[%c0_3] : memref<3xf32, #tpu.memory_space<smem>>
    %6 = vector.broadcast %5 : f32 to vector<16x128xf32>
    %7 = arith.mulf %6, %0 : vector<16x128xf32>
    %c0_4 = arith.constant 0 : index
    %8 = memref.load %arg2[%c0_4] : memref<3xf32, #tpu.memory_space<smem>>
    %9 = vector.broadcast %8 : f32 to vector<16x128xf32>
    %10 = arith.addf %7, %9 : vector<16x128xf32>
    %c1 = arith.constant 1 : index
    %11 = memref.load %arg1[%c1] : memref<3xf32, #tpu.memory_space<smem>>
    %12 = vector.broadcast %11 : f32 to vector<16x128xf32>
    %13 = arith.mulf %12, %0 : vector<16x128xf32>
    %c1_5 = arith.constant 1 : index
    %14 = memref.load %arg2[%c1_5] : memref<3xf32, #tpu.memory_space<smem>>
    %15 = vector.broadcast %14 : f32 to vector<16x128xf32>
    %16 = arith.addf %13, %15 : vector<16x128xf32>
    %c2 = arith.constant 2 : index
    %17 = memref.load %arg1[%c2] : memref<3xf32, #tpu.memory_space<smem>>
    %18 = vector.broadcast %17 : f32 to vector<16x128xf32>
    %19 = arith.mulf %18, %0 : vector<16x128xf32>
    %c2_6 = arith.constant 2 : index
    %20 = memref.load %arg2[%c2_6] : memref<3xf32, #tpu.memory_space<smem>>
    %21 = vector.broadcast %20 : f32 to vector<16x128xf32>
    %22 = arith.addf %19, %21 : vector<16x128xf32>
    %23 = arith.maximumf %10, %16 : vector<16x128xf32>
    %24 = arith.maximumf %23, %22 : vector<16x128xf32>
    %25 = arith.subf %10, %24 : vector<16x128xf32>
    %26 = math.exp %25 : vector<16x128xf32>
    %27 = arith.subf %16, %24 : vector<16x128xf32>
    %28 = math.exp %27 : vector<16x128xf32>
    %29 = arith.subf %22, %24 : vector<16x128xf32>
    %30 = math.exp %29 : vector<16x128xf32>
    %31 = arith.addf %26, %28 : vector<16x128xf32>
    %32 = arith.addf %31, %30 : vector<16x128xf32>
    %33 = tpu.reciprocal %32 {approx = true} : vector<16x128xf32> -> vector<16x128xf32>
    %cst_7 = arith.constant 0.000000e+00 : f32
    %34 = vector.broadcast %cst_7 : f32 to vector<16x128xf32>
    %35 = vector.extract_strided_slice %2 {offsets = [0, 0], sizes = [16, 128], strides = [1, 1]} : vector<64x128xf32> to vector<16x128xf32>
    %36 = arith.mulf %26, %33 : vector<16x128xf32>
    %37 = arith.mulf %35, %36 : vector<16x128xf32>
    %38 = arith.addf %34, %37 : vector<16x128xf32>
    %39 = vector.extract_strided_slice %2 {offsets = [16, 0], sizes = [16, 128], strides = [1, 1]} : vector<64x128xf32> to vector<16x128xf32>
    %40 = arith.mulf %28, %33 : vector<16x128xf32>
    %41 = arith.mulf %39, %40 : vector<16x128xf32>
    %42 = arith.addf %38, %41 : vector<16x128xf32>
    %43 = vector.extract_strided_slice %2 {offsets = [32, 0], sizes = [16, 128], strides = [1, 1]} : vector<64x128xf32> to vector<16x128xf32>
    %44 = arith.mulf %30, %33 : vector<16x128xf32>
    %45 = arith.mulf %43, %44 : vector<16x128xf32>
    %46 = arith.addf %42, %45 : vector<16x128xf32>
    %c0_8 = arith.constant 0 : index
    %c0_9 = arith.constant 0 : index
    %47 = vector.load %arg7[%c0_8, %c0_9] : memref<16x128xf32, #tpu.memory_space<vmem>>, vector<16x128xf32>
    tpu.vector_store %arg7[%c0_8, %c0_9], %46 {strides = array<i32>} : memref<16x128xf32, #tpu.memory_space<vmem>>, vector<16x128xf32>,
    %48 = arith.mulf %3, %3 : vector<8x128xf32>
    %49 = arith.mulf %4, %4 : vector<8x128xf32>
    %50 = arith.addf %48, %49 : vector<8x128xf32>
    %51 = tpu.iota {dimensions = array<i32: 0>} : vector<8x128xi32>
    %cst_10 = arith.constant 0.000000e+00 : f32
    %52 = vector.broadcast %cst_10 : f32 to vector<8x128xf32>
    %53 = vector.extract_strided_slice %50 {offsets = [0, 0], sizes = [1, 128], strides = [1, 1]} : vector<8x128xf32> to vector<1x128xf32>
    %54 = vector.broadcast %53 : vector<1x128xf32> to vector<8x128xf32>
    %55 = arith.cmpf ogt, %54, %50 : vector<8x128xf32>
    %56 = vector.broadcast %53 : vector<1x128xf32> to vector<8x128xf32>
    %57 = arith.cmpf oeq, %56, %50 : vector<8x128xf32>
    %c0_i32 = arith.constant 0 : i32
    %58 = vector.broadcast %c0_i32 : i32 to vector<8x128xi32>
    %59 = arith.cmpi sgt, %51, %58 : vector<8x128xi32>
    %60 = arith.andi %57, %59 : vector<8x128xi1>
    %61 = arith.ori %55, %60 : vector<8x128xi1>
    %62 = arith.extui %61 : vector<8x128xi1> to vector<8x128xi32>
    %63 = arith.sitofp %62 : vector<8x128xi32> to vector<8x128xf32>
    %64 = arith.addf %52, %63 : vector<8x128xf32>
    %65 = vector.extract_strided_slice %50 {offsets = [1, 0], sizes = [1, 128], strides = [1, 1]} : vector<8x128xf32> to vector<1x128xf32>
    %66 = vector.broadcast %65 : vector<1x128xf32> to vector<8x128xf32>
    %67 = arith.cmpf ogt, %66, %50 : vector<8x128xf32>
    %68 = vector.broadcast %65 : vector<1x128xf32> to vector<8x128xf32>
    %69 = arith.cmpf oeq, %68, %50 : vector<8x128xf32>
    %c1_i32 = arith.constant 1 : i32
    %70 = vector.broadcast %c1_i32 : i32 to vector<8x128xi32>
    %71 = arith.cmpi sgt, %51, %70 : vector<8x128xi32>
    %72 = arith.andi %69, %71 : vector<8x128xi1>
    %73 = arith.ori %67, %72 : vector<8x128xi1>
    %74 = arith.extui %73 : vector<8x128xi1> to vector<8x128xi32>
    %75 = arith.sitofp %74 : vector<8x128xi32> to vector<8x128xf32>
    %76 = arith.addf %64, %75 : vector<8x128xf32>
    %77 = vector.extract_strided_slice %50 {offsets = [2, 0], sizes = [1, 128], strides = [1, 1]} : vector<8x128xf32> to vector<1x128xf32>
    %78 = vector.broadcast %77 : vector<1x128xf32> to vector<8x128xf32>
    %79 = arith.cmpf ogt, %78, %50 : vector<8x128xf32>
    %80 = vector.broadcast %77 : vector<1x128xf32> to vector<8x128xf32>
    %81 = arith.cmpf oeq, %80, %50 : vector<8x128xf32>
    %c2_i32 = arith.constant 2 : i32
    %82 = vector.broadcast %c2_i32 : i32 to vector<8x128xi32>
    %83 = arith.cmpi sgt, %51, %82 : vector<8x128xi32>
    %84 = arith.andi %81, %83 : vector<8x128xi1>
    %85 = arith.ori %79, %84 : vector<8x128xi1>
    %86 = arith.extui %85 : vector<8x128xi1> to vector<8x128xi32>
    %87 = arith.sitofp %86 : vector<8x128xi32> to vector<8x128xf32>
    %88 = arith.addf %76, %87 : vector<8x128xf32>
    %89 = vector.extract_strided_slice %50 {offsets = [3, 0], sizes = [1, 128], strides = [1, 1]} : vector<8x128xf32> to vector<1x128xf32>
    %90 = vector.broadcast %89 : vector<1x128xf32> to vector<8x128xf32>
    %91 = arith.cmpf ogt, %90, %50 : vector<8x128xf32>
    %92 = vector.broadcast %89 : vector<1x128xf32> to vector<8x128xf32>
    %93 = arith.cmpf oeq, %92, %50 : vector<8x128xf32>
    %c3_i32 = arith.constant 3 : i32
    %94 = vector.broadcast %c3_i32 : i32 to vector<8x128xi32>
    %95 = arith.cmpi sgt, %51, %94 : vector<8x128xi32>
    %96 = arith.andi %93, %95 : vector<8x128xi1>
    %97 = arith.ori %91, %96 : vector<8x128xi1>
    %98 = arith.extui %97 : vector<8x128xi1> to vector<8x128xi32>
    %99 = arith.sitofp %98 : vector<8x128xi32> to vector<8x128xf32>
    %100 = arith.addf %88, %99 : vector<8x128xf32>
    %101 = vector.extract_strided_slice %50 {offsets = [4, 0], sizes = [1, 128], strides = [1, 1]} : vector<8x128xf32> to vector<1x128xf32>
    %102 = vector.broadcast %101 : vector<1x128xf32> to vector<8x128xf32>
    %103 = arith.cmpf ogt, %102, %50 : vector<8x128xf32>
    %104 = vector.broadcast %101 : vector<1x128xf32> to vector<8x128xf32>
    %105 = arith.cmpf oeq, %104, %50 : vector<8x128xf32>
    %c4_i32 = arith.constant 4 : i32
    %106 = vector.broadcast %c4_i32 : i32 to vector<8x128xi32>
    %107 = arith.cmpi sgt, %51, %106 : vector<8x128xi32>
    %108 = arith.andi %105, %107 : vector<8x128xi1>
    %109 = arith.ori %103, %108 : vector<8x128xi1>
    %110 = arith.extui %109 : vector<8x128xi1> to vector<8x128xi32>
    %111 = arith.sitofp %110 : vector<8x128xi32> to vector<8x128xf32>
    %112 = arith.addf %100, %111 : vector<8x128xf32>
    %113 = vector.extract_strided_slice %50 {offsets = [5, 0], sizes = [1, 128], strides = [1, 1]} : vector<8x128xf32> to vector<1x128xf32>
    %114 = vector.broadcast %113 : vector<1x128xf32> to vector<8x128xf32>
    %115 = arith.cmpf ogt, %114, %50 : vector<8x128xf32>
    %116 = vector.broadcast %113 : vector<1x128xf32> to vector<8x128xf32>
    %117 = arith.cmpf oeq, %116, %50 : vector<8x128xf32>
    %c5_i32 = arith.constant 5 : i32
    %118 = vector.broadcast %c5_i32 : i32 to vector<8x128xi32>
    %119 = arith.cmpi sgt, %51, %118 : vector<8x128xi32>
    %120 = arith.andi %117, %119 : vector<8x128xi1>
    %121 = arith.ori %115, %120 : vector<8x128xi1>
    %122 = arith.extui %121 : vector<8x128xi1> to vector<8x128xi32>
    %123 = arith.sitofp %122 : vector<8x128xi32> to vector<8x128xf32>
    %124 = arith.addf %112, %123 : vector<8x128xf32>
    %125 = vector.extract_strided_slice %50 {offsets = [6, 0], sizes = [1, 128], strides = [1, 1]} : vector<8x128xf32> to vector<1x128xf32>
    %126 = vector.broadcast %125 : vector<1x128xf32> to vector<8x128xf32>
    %127 = arith.cmpf ogt, %126, %50 : vector<8x128xf32>
    %128 = vector.broadcast %125 : vector<1x128xf32> to vector<8x128xf32>
    %129 = arith.cmpf oeq, %128, %50 : vector<8x128xf32>
    %c6_i32 = arith.constant 6 : i32
    %130 = vector.broadcast %c6_i32 : i32 to vector<8x128xi32>
    %131 = arith.cmpi sgt, %51, %130 : vector<8x128xi32>
    %132 = arith.andi %129, %131 : vector<8x128xi1>
    %133 = arith.ori %127, %132 : vector<8x128xi1>
    %134 = arith.extui %133 : vector<8x128xi1> to vector<8x128xi32>
    %135 = arith.sitofp %134 : vector<8x128xi32> to vector<8x128xf32>
    %136 = arith.addf %124, %135 : vector<8x128xf32>
    %cst_11 = arith.constant 3.000000e+00 : f32
    %137 = vector.broadcast %cst_11 : f32 to vector<8x128xf32>
    %138 = arith.cmpf olt, %136, %137 : vector<8x128xf32>
    %c7_i32 = arith.constant 7 : i32
    %139 = vector.broadcast %c7_i32 : i32 to vector<8x128xi32>
    %140 = arith.cmpi slt, %51, %139 : vector<8x128xi32>
    %141 = arith.andi %138, %140 : vector<8x128xi1>
    %142 = arith.extui %141 : vector<8x128xi1> to vector<8x128xi32>
    %143 = arith.sitofp %142 : vector<8x128xi32> to vector<8x128xf32>
    %144 = arith.mulf %3, %143 : vector<8x128xf32>
    %145 = arith.mulf %4, %143 : vector<8x128xf32>
    %146 = tpu.concatenate %144, %145 in 0 : vector<8x128xf32>, vector<8x128xf32> -> vector<16x128xf32>
    %c0_12 = arith.constant 0 : index
    %c0_13 = arith.constant 0 : index
    %147 = vector.load %arg5[%c0_12, %c0_13] : memref<16x16xf32, #tpu.memory_space<vmem>>, vector<16x16xf32>
    %cst_14 = arith.constant dense<0.000000e+00> : vector<16x128xf32>
    %148 = tpu.matmul %147, %146, %cst_14 {dimension_numbers = #tpu.dot_dimension_numbers<[1], [0], [0], [1], [0, 0, 1, 1], [], []>} : vector<16x16xf32>, vector<16x128xf32>, vector<16x128xf32> -> vector<16x128xf32>
    %c0_15 = arith.constant 0 : index
    %c0_16 = arith.constant 0 : index
    %149 = vector.load %arg6[%c0_15, %c0_16] : memref<16x128xf32, #tpu.memory_space<vmem>>, vector<16x128xf32>
    tpu.vector_store %arg6[%c0_15, %c0_16], %148 {strides = array<i32>} : memref<16x128xf32, #tpu.memory_space<vmem>>, vector<16x128xf32>,
    return
  }
  func.func @transform_0(%arg0: i32) -> i32 {
    %c0_i32 = arith.constant 0 : i32
    %c0_i32_0 = arith.constant 0 : i32
    return %c0_i32 : i32
  }
  func.func @transform_1(%arg0: i32) -> i32 {
    %c0_i32 = arith.constant 0 : i32
    %c0_i32_0 = arith.constant 0 : i32
    return %c0_i32 : i32
  }
  func.func @transform_2(%arg0: i32) -> (i32, i32) {
    %c0_i32 = arith.constant 0 : i32
    %c0_i32_0 = arith.constant 0 : i32
    return %c0_i32, %arg0 : i32, i32
  }
  func.func @transform_3(%arg0: i32) -> (i32, i32) {
    %c0_i32 = arith.constant 0 : i32
    %c0_i32_0 = arith.constant 0 : i32
    %c0_i32_1 = arith.constant 0 : i32
    return %c0_i32, %c0_i32_0 : i32, i32
  }
  func.func @transform_4(%arg0: i32) -> (i32, i32) {
    %c0_i32 = arith.constant 0 : i32
    %c0_i32_0 = arith.constant 0 : i32
    %c0_i32_1 = arith.constant 0 : i32
    return %c0_i32, %c0_i32_0 : i32, i32
  }
  func.func @transform_5(%arg0: i32) -> (i32, i32) {
    %c0_i32 = arith.constant 0 : i32
    %c0_i32_0 = arith.constant 0 : i32
    return %c0_i32, %arg0 : i32, i32
  }
  func.func @transform_6(%arg0: i32) -> (i32, i32) {
    %c0_i32 = arith.constant 0 : i32
    %c0_i32_0 = arith.constant 0 : i32
    return %c0_i32, %arg0 : i32, i32
  }
}

</mosaic_0001>

<bundles_post_ra>
// kernel: tpu_custom_call.1
= control target key start
LH: loop header
LB: loop body
LE: loop exit
PB: predicated region body
PF: predicated region fallthrough
CT: control target
= control target key end

     0   :  { %s1267_s0 = inlined_call_operand.vmem [shape: f32[3], index: 0, kind: input, shape index: {}]   ;;  %s1268_s1 = inlined_call_operand.vmem [shape: f32[3], index: 1, kind: input, shape index: {}]   ;;  %s1269_s2 = inlined_call_operand.vmem [shape: f32[16,256], index: 2, kind: input, shape index: {}]   ;;  %s1270_s3 = inlined_call_operand.vmem [shape: f32[64,16], index: 3, kind: input, shape index: {}]   ;;  %s1271_s4 = inlined_call_operand.vmem [shape: f32[16,16], index: 4, kind: input, shape index: {}]   ;;  %s1272_s5 = inlined_call_operand.hbm [shape: f32[16,256], index: 5, kind: output, shape index: {0}]   ;;  %s1273_s6 = inlined_call_operand.hbm [shape: f32[16,256], index: 6, kind: output, shape index: {1}]  }
   0x1   :  { %1276 = sst [smem:[#allocation15_spill]] %s1267_s0 }
   0x2   :  { %1277 = sst [smem:[#allocation16_spill]] %s1268_s1 }
   0x3   :  { %1278 = sst [smem:[#allocation17_spill]] %s1269_s2 }
   0x4   :  { %12 = vsyncpa [#allocation4], 0 }
   0x5   :  { %13 = vsyncpa [#allocation6], 0 }
   0x6   :  { %14 = vsyncpa [#allocation3], 0 }
   0x7   :  { %16 = vsyncpa [#allocation3 + $0x1], 0 }
   0x8   :  { %17 = vsyncpa [#allocation10], 0 }
   0x9   :  { %19 = vsyncpa [#allocation10 + $0x1], 0  ;;  %s1047_s21 = smov 0   ;;  %s1049_s22 = smov 0  }
   0xa   :  { %s1051_s23 = smov 0   ;;  %s1053_s24 = smov 0  }
   0xb LB: > { %s1068_s25 = sadd.s32 4294967295, %s1004_s24   ;;  %s742_s26 = sadd.s32 4294967294, %s1004_s24   ;;  %s1004_s24 = sphi %s1053_s24, %s1292_s24   ;;  %s1000_s23 = sphi %s1051_s23, %s1291_s23   ;;  %s996_s22 = sphi %s1049_s22, %s1290_s22   ;;  %s992_s21 = sphi %s1047_s21, %s1289_s21  }
   0xc   : > { %s1072_s27 = sadd.s32 1, %s1004_s24   ;;  %s74_s28 = sadd.s32 1, %s1000_s23 }
   0xd   : > { %s71_s29 = ssub.s32 %s1004_s24, %s1072_s27  ;;  %p81_p0 = scmp.ne.s32.totalorder %s1000_s23, %s996_s22 }
   0xe   : > { %p72_p1 = scmp.eq.s32.totalorder %s71_s29, 0  ;;  %p82_p2 = scmp.eq.s32.totalorder %s1004_s24, 0 }
   0xf   : > { %p153_p3 = scmp.eq.s32.totalorder %s1068_s25, 1  ;;  %p158_p4 = scmp.ne.s32.totalorder %s996_s22, %s992_s21 }
  0x10   : > { %s1084_s30 = scalar_select %p72_p1, %s1000_s23, %s74_s28  }
  0x11   : > { %p1086_p5 = por %p82_p2, %p81_p0  ;;  %p1090_p6 = por %p153_p3, %p81_p0 }
  0x12   : > { %p159_p7 = scmp.eq.s32.totalorder %s742_s26, 1  ;;  %p743_p8 = scmp.ge.s32.totalorder %s1004_s24, 1 }
  0x13   : > { %p192_p9 = scmp.lt.s32.totalorder %s1004_s24, 3  ;;  %p813_p11 = scmp.eq.s32.totalorder %s1068_s25, 0 }
  0x14   : > { %p1096_p10 = por %p159_p7, %p158_p4  ;;  %s1283_s0 = sld [smem:[#allocation15_spill]] }
  0x15   : > { %p1101_p12 = pnand %p743_p8, %p192_p9  ;;  %s1284_s1 = sld [smem:[#allocation16_spill]] }
  0x16   : > { %s1006_s17 = smov [#allocation2]   ;;  %s1007_s18 = smov [#allocation5]  }
  0x17   : > { %p799_p13 = pneg %p1101_p12  ;;  %p746_p1 = scmp.ge.s32.totalorder %s1004_s24, 2 }
  0x19   : > { %p800_p0 = pnand %p813_p11, %p799_p13  ;;  %227 = sbr.rel (%p746_p1) target bundleno = 42 (0x2a), region = 32 }
  0x1a   : > { %s204_s13 = sshll.u32 %s1283_s0, 4  ;;  %s205_s13 = int_to_ptr.vmem [resolvable:$true] %s204_s13 }
  0x1b   : > { %s214_s16 = sshll.u32 %s1284_s1, 4  ;;  %s215_s16 = int_to_ptr.vmem [resolvable:$true] %s214_s16 }
  0x1c   : > { %802 = dma.vmem_to_smem (!%p800_p0), %s205_s13, 16, %s1006_s17, [#allocation4]  }
  0x1d   : > { %805 = dma.vmem_to_smem (!%p800_p0), %s215_s16, 16, %s1007_s18, [#allocation6]  }
  0x1e   : > { %230 = sbr.rel (!%p1086_p5) target bundleno = 42 (0x2a), region = 36  ;;  %s232_s19 = sand.u32 (%p1086_p5), 1, %s1000_s23  }
  0x1f   : > { %s748_s20 = sshll.u32 (%p1086_p5), %s1004_s24, 3  ;;  %s747_s26 = sshll.u32 (%p1086_p5), %s232_s19, 4 }
  0x20   : > { %s1285_s2 = sld [smem:[#allocation17_spill]] (%p1086_p5)  ;;  %s234_s12 = scalar_lea.vmem (%p1086_p5), [#allocation7], %s747_s26 }
  0x26   : > { %s236_s11 = scalar_lea.vmem %s1285_s2, %s748_s20 }
  0x27   : > { %v267_v0 = vld [vmem:[%s236_s11] sm:$0xff]  ;;  %v269_v1 = vld [vmem:[%s236_s11 + $0x10] sm:$0xff] }
  0x28   : > { %268 = vst [vmem:[%s234_s12] sm:$0xff] %v267_v0 }
  0x29   : > { %270 = vst [vmem:[%s234_s12 + $0x8] sm:$0xff] %v269_v1 }
  0x2a PF: > { %279 = sbr.rel (%p1101_p12) target bundleno = 367 (0x16f), region = 74 }
  0x2f   : > { %975 = dma.done.wait (%p813_p11), [#allocation4], 16  }
  0x30   : > { %977 = vsyncadd (%p813_p11), [#allocation4], 4294967280 }
  0x31   : > { %979 = dma.done.wait (%p813_p11), [#allocation6], 16  }
  0x32   : > { %981 = vsyncadd (%p813_p11), [#allocation6], 4294967280  ;;  %s1136_s7 = sand.u32 1, %s996_s22  }
  0x33   : > { %s1139_s13 = sshll.u32 %s1136_s7, 4 }
  0x34   : > { %s294_s10 = scalar_lea.vmem [#allocation7], %s1139_s13 }
  0x35   : > { %298 = sfence }
  0x36   : > { %v1142_v2 = vld [vmem:[%s294_s10 + $0x8] sm:$0xff]  ;;  %v1144_v3 = vld [vmem:[%s294_s10] sm:$0xff]  ;;  %vm1274_vm0 = vcmask 130048   ;;  %v478_v13 = vlaneseq  ;;  %v1008_v24 = vmov 0.0   ;;  %s403_s26 = sld [smem:[#allocation2]]  ;;  %s1275_s14 = sshll.u32 %s1068_s25, 3 }
  0x37   : > { %784 = vmatpush.msra.mxu3 %v1142_v2  ;;  %v335_v4 = vld [vmem:[%s1270_s3 + $0x30] sm:$0xff]  ;;  %783 = vmatpush.msra.mxu2 %v1142_v2  ;;  %v336_v5 = vld [vmem:[%s1270_s3 + $0x38] sm:$0xff]  ;;  %v329_v7 = vld [vmem:[%s1270_s3] sm:$0xff]  ;;  %s763_s28 = sld [smem:[#allocation2 + $0x1]]  ;;  %s615_s17 = scalar_lea.hbm %s1273_s6, %s1275_s14 }
  0x38   : > { %376 = vmatpush.msra.mxu0 %v1142_v2  ;;  %v332_v6 = vld [vmem:[%s1270_s3 + $0x18] sm:$0xff]  ;;  %v333_v8 = vld [vmem:[%s1270_s3 + $0x20] sm:$0xff]  ;;  %v330_v9 = vld [vmem:[%s1270_s3 + $0x8] sm:$0xff]  ;;  %v479_v17 = vshrl.u32 %v478_v13, 7  ;;  %s407_s29 = sld [smem:[#allocation5]]  ;;  %s326_s18 = scalar_lea.vmem [#allocation9], %s1139_s13 }
  0x39   : > { %786 = vmatpush.msra.mxu3 %v1144_v3  ;;  %785 = vmatpush.msra.mxu2 %v1144_v3  ;;  %v334_v10 = vld [vmem:[%s1270_s3 + $0x28] sm:$0xff]  ;;  %v331_v11 = vld [vmem:[%s1270_s3 + $0x10] sm:$0xff]  ;;  %v550_v43 = vld [vmem:[%s1271_s4] sm:$0xff]  ;;  %s764_s11 = sld [smem:[#allocation5 + $0x1]]  ;;  %s616_s19 = sshll.u32 %s326_s18, 4  ;;  %s617_s19 = int_to_ptr.vmem [resolvable:$true] %s616_s19 }
  0x3a   : > { %761 = vmatmul.msk.f32.vlgmr.msra.gmra.mxu3 %vm1274_vm0, %v335_v4  ;;  %377 = vmatpush.msra.mxu0 %v1144_v3  ;;  %vm483_vm1 = vcmp.gt.s32.totalorder %v479_v17, 0  ;;  %vm492_vm2 = vcmp.gt.s32.totalorder %v479_v17, 1  ;;  %vm501_vm10 = vcmp.gt.s32.totalorder %v479_v17, 2  ;;  %vm510_vm15 = vcmp.gt.s32.totalorder %v479_v17, 3  ;;  %v551_v44 = vld [vmem:[%s1271_s4 + $0x8] sm:$0xff]  ;;  %s765_s12 = sld [smem:[#allocation2 + $0x2]] }
  0x3b   : > { %758 = vmatmul.msk.f32.vlgmr.msra.gmra.mxu2 %vm1274_vm0, %v332_v6  ;;  %755 = vmatmul.msk.f32.vlgmr.msra.gmra.mxu0 %vm1274_vm0, %v329_v7  ;;  %s766_s10 = sld [smem:[#allocation5 + $0x2]]  ;;  %s618_s20 = sshll.u32 %s615_s17, 4  ;;  %s619_s20 = int_to_ptr.hbm [resolvable:$true] %s618_s20 }
  0x3c   : > { %v404_v45 = vstv %s403_s26  ;;  %s589_s26 = scalar_lea.sflag [#allocation10], %s1136_s7 }
  0x3d   : > { %v412_v46 = vstv %s763_s28  ;;  %v406_v47 = vmul.f32 %v404_v45, %v1142_v2  ;;  %v405_v52 = vmul.f32 %v404_v45, %v1144_v3  ;;  %s916_s28 = sshra.s32 %s619_s20, 4  ;;  %s917_s28 = int_to_ptr.hbm [resolvable:$true] %s916_s28 }
  0x3e   : > { %v414_v48 = vmul.f32 %v412_v46, %v1142_v2  ;;  %v408_v49 = vstv %s407_s29  ;;  %v413_v53 = vmul.f32 %v412_v46, %v1144_v3  ;;  %s918_s29 = scalar_lea.hbm %s917_s28, 16  ;;  %p923_p5 = scmp.lt.s32.totalorder %s917_s28, %s1273_s6 }
  0x3f   : > { %v416_v50 = vstv %s764_s11  ;;  %v410_v54 = vadd.f32 %v408_v49, %v406_v47  ;;  %v409_v58 = vadd.f32 %v408_v49, %v405_v52  ;;  %p919_p2 = scmp.ne.s32.totalorder %s917_s28, %s918_s29 }
  0x40   : > { %v420_v51 = vstv %s765_s12  ;;  %v418_v55 = vadd.f32 %v416_v50, %v414_v48  ;;  %v417_v59 = vadd.f32 %v416_v50, %v413_v53 }
  0x41   : > { %v422_v56 = vmul.f32 %v420_v51, %v1142_v2  ;;  %v424_v57 = vstv %s766_s10  ;;  %v421_v60 = vmul.f32 %v420_v51, %v1144_v3  ;;  %p920_p3 = pnand %p919_p2, %p1090_p6  ;;  %s922_s10 = scalar_lea.hbm %s1273_s6, 32 }
  0x42   : > { %762 = vmatmul.msk.f32.gmra.mxu3 %vm1274_vm0, %v336_v5  ;;  %v428_v62 = vmax.f32 %v410_v54, %v418_v55  ;;  %v427_v0 = vmax.f32 %v409_v58, %v417_v59  ;;  %p924_p7 = scmp.lt.s32.totalorder %s922_s10, %s918_s29 }
  0x43   : > { %759 = vmatmul.msk.f32.gmra.mxu2 %vm1274_vm0, %v333_v8  ;;  %756 = vmatmul.msk.f32.gmra.mxu0 %vm1274_vm0, %v330_v9  ;;  %v426_v61 = vadd.f32 %v424_v57, %v422_v56  ;;  %v425_v63 = vadd.f32 %v424_v57, %v421_v60  ;;  %p921_p4 = pneg %p920_p3 }
  0x44   : > { %p925_p8 = por %p924_p7, %p923_p5 }
  0x45   : > { %v430_v1 = vmax.f32 %v428_v62, %v426_v61  ;;  %v429_v4 = vmax.f32 %v427_v0, %v425_v63 }
  0x46   : > { %p926_p9 = pnand %p925_p8, %p921_p4 }
  0x47   : > { %v432_v5 = vsub.f32 %v410_v54, %v430_v1  ;;  %v438_v6 = vsub.f32 %v418_v55, %v430_v1  ;;  %v437_v7 = vsub.f32 %v417_v59, %v429_v4  ;;  %v431_v9 = vsub.f32 %v409_v58, %v429_v4 }
  0x48   : > { %v443_v2 = vsub.f32 %v425_v63, %v429_v4 }
  0x49   : > { %v435_v8 = vmul.f32 1.442695, %v432_v5  ;;  %v433_v13 = vmul.f32 1.442695, %v431_v9 }
  0x4a   : > { %v445_v3 = vmul.f32 1.442695, %v443_v2 }
  0x4b   : > { %760 = vmatmul.msk.f32.gmra.mxu2 %vm1274_vm0, %v334_v10  ;;  %757 = vmatmul.msk.f32.gmra.mxu0 %vm1274_vm0, %v331_v11  ;;  %v444_v10 = vsub.f32 %v426_v61, %v430_v1  ;;  %v441_v11 = vmul.f32 1.442695, %v438_v6  ;;  %856 = vpow2.f32 %v435_v8 }
  0x4d   : > { %858 = vpow2.f32 %v441_v11 }
  0xbd   : > { %v1184_v12 = vpop.f32.mrf.mxu3 }
  0xbe   : > { %v475_v15 = vmul.f32 %v1184_v12, %v1184_v12 }
  0xc5   : > { %v1186_v14 = vpop.f32.mrf.mxu3 }
  0xc6   : > { %v476_v16 = vmul.f32 %v1186_v14, %v1186_v14 }
  0xc8   : > { %v477_v18 = vadd.f32 %v476_v16, %v475_v15  ;;  %v857_v15 = vpop.eup %856 }
  0xc9   : > { %v859_v16 = vpop.eup %858 }
  0xca   : > { %v480_v19 = vperm.slane %v477_v18, 0  ;;  %v489_v20 = vperm.slane %v477_v18, 1  ;;  %v498_v21 = vperm.slane %v477_v18, 2  ;;  %v507_v22 = vperm.slane %v477_v18, 3 }
  0xcb   : > { %v516_v23 = vperm.slane %v477_v18, 4  ;;  %v525_v26 = vperm.slane %v477_v18, 5  ;;  %v534_v29 = vperm.slane %v477_v18, 6 }
  0xcc   : > { %vm481_vm3 = vcmp.gt.f32.partialorder %v480_v19, %v477_v18  ;;  %vm482_vm4 = vcmp.eq.f32.partialorder %v480_v19, %v477_v18  ;;  %vm491_vm5 = vcmp.eq.f32.partialorder %v489_v20, %v477_v18  ;;  %vm490_vm7 = vcmp.gt.f32.partialorder %v489_v20, %v477_v18 }
  0xcd   : > { %vm484_vm6 = vmand %vm482_vm4, %vm483_vm1  ;;  %vm500_vm9 = vcmp.eq.f32.partialorder %v498_v21, %v477_v18  ;;  %vm499_vm12 = vcmp.gt.f32.partialorder %v498_v21, %v477_v18  ;;  %vm509_vm14 = vcmp.eq.f32.partialorder %v507_v22, %v477_v18  ;;  %vm508_vm1 = vcmp.gt.f32.partialorder %v507_v22, %v477_v18 }
  0xce   : > { %vm485_vm8 = vmor %vm481_vm3, %vm484_vm6  ;;  %vm518_vm3 = vcmp.eq.f32.partialorder %v516_v23, %v477_v18  ;;  %vm519_vm6 = vcmp.gt.s32.totalorder %v479_v17, 4  ;;  %v450_v19 = vadd.f32 %v859_v16, %v857_v15 }
  0xcf   : > { %v767_v25 = vsel %vm485_vm8, 1.0, %v1008_v24  ;;  %vm493_vm11 = vmand %vm491_vm5, %vm492_vm2  ;;  %vm517_vm2 = vcmp.gt.f32.partialorder %v516_v23, %v477_v18 }
  0xd0   : > { %vm494_vm13 = vmor %vm490_vm7, %vm493_vm11  ;;  %vm527_vm7 = vcmp.eq.f32.partialorder %v525_v26, %v477_v18  ;;  %vm528_vm11 = vcmp.gt.s32.totalorder %v479_v17, 5 }
  0xd1   : > { %v768_v27 = vsel %vm494_vm13, 1.0, %v1008_v24  ;;  %vm502_vm0 = vmand %vm500_vm9, %vm501_vm10  ;;  %vm526_vm9 = vcmp.gt.f32.partialorder %v525_v26, %v477_v18  ;;  %v379_v26 = vpop.f32.mrf.mxu0 }
  0xd2   : > { %v497_v28 = vadd.f32 %v768_v27, %v767_v25  ;;  %vm503_vm4 = vmor %vm499_vm12, %vm502_vm0  ;;  %vm536_vm0 = vcmp.eq.f32.partialorder %v534_v29, %v477_v18  ;;  %vm537_vm12 = vcmp.gt.s32.totalorder %v479_v17, 6  ;;  %v388_v25 = vpop.f32.mrf.mxu2 }
  0xd3   : > { %v769_v30 = vsel %vm503_vm4, 1.0, %v1008_v24  ;;  %vm511_vm8 = vmand %vm509_vm14, %vm510_vm15  ;;  %vm535_vm14 = vcmp.gt.f32.partialorder %v534_v29, %v477_v18 }
  0xd4   : > { %v506_v31 = vadd.f32 %v769_v30, %v497_v28  ;;  %vm512_vm5 = vmor %vm508_vm1, %vm511_vm8 }
  0xd5   : > { %v770_v32 = vsel %vm512_vm5, 1.0, %v1008_v24  ;;  %vm520_vm13 = vmand %vm518_vm3, %vm519_vm6  ;;  %vm544_vm5 = vcmp.lt.s32.totalorder %v479_v17, 7 }
  0xd6   : > { %v515_v33 = vadd.f32 %v770_v32, %v506_v31  ;;  %vm521_vm10 = vmor %vm517_vm2, %vm520_vm13  ;;  %vm1286_vm2 = vcmask 130048  }
  0xd7   : > { %v771_v34 = vsel %vm521_vm10, 1.0, %v1008_v24  ;;  %vm529_vm4 = vmand %vm527_vm7, %vm528_vm11 }
  0xd8   : > { %v524_v35 = vadd.f32 %v771_v34, %v515_v33  ;;  %vm530_vm15 = vmor %vm526_vm9, %vm529_vm4 }
  0xd9   : > { %v772_v36 = vsel %vm530_vm15, 1.0, %v1008_v24  ;;  %vm538_vm1 = vmand %vm536_vm0, %vm537_vm12  ;;  %v382_v30 = vpop.f32.mrf.mxu0 }
  0xda   : > { %v533_v37 = vadd.f32 %v772_v36, %v524_v35  ;;  %vm539_vm8 = vmor %vm535_vm14, %vm538_vm1  ;;  %v391_v32 = vpop.f32.mrf.mxu2 }
  0xdb   : > { %v773_v38 = vsel %vm539_vm8, 1.0, %v1008_v24  ;;  %vm1287_vm7 = vmmov %vm1286_vm2 }
  0xdc   : > { %v542_v39 = vadd.f32 %v773_v38, %v533_v37 }
  0xde   : > { %vm543_vm3 = vcmp.lt.f32.partialorder %v542_v39, 3.0 }
  0xdf   : > { %vm545_vm6 = vmand %vm543_vm3, %vm544_vm5 }
  0xe0   : > { %v774_v40 = vsel %vm545_vm6, 1.0, %v1008_v24 }
  0xe1   : > { %v549_v41 = vmul.f32 %v774_v40, %v1186_v14  ;;  %v548_v42 = vmul.f32 %v774_v40, %v1184_v12  ;;  %v439_v12 = vmul.f32 1.442695, %v437_v7  ;;  %v447_v14 = vmul.f32 1.442695, %v444_v10 }
  0xe3   : > { %572 = vmatpush.msra.mxu1 %v549_v41  ;;  %860 = vpow2.f32 %v439_v12  ;;  %v385_v41 = vpop.f32.mrf.mxu0 }
  0xe4   : > { %862 = vpow2.f32 %v433_v13 }
  0xe5   : > { %573 = vmatpush.msra.mxu1 %v548_v42  ;;  %864 = vpow2.f32 %v447_v14 }
  0xe6   : > { %775 = vmatmul.msk.f32.vlgmr.msra.gmra.mxu1 %vm1286_vm2, %v550_v43  ;;  %866 = vpow2.f32 %v445_v3 }
  0xe9   : > { %v861_v17 = vpop.eup %860 }
  0xea   : > { %v863_v18 = vpop.eup %862 }
  0xeb   : > { %v865_v20 = vpop.eup %864  ;;  %v449_v21 = vadd.f32 %v863_v18, %v861_v17 }
  0xec   : > { %v867_v22 = vpop.eup %866  ;;  %v452_v23 = vadd.f32 %v865_v20, %v450_v19 }
  0xed   : > { %v451_v24 = vadd.f32 %v867_v22, %v449_v21 }
  0xee   : > { %776 = vmatmul.msk.f32.gmra.mxu1 %vm1287_vm7, %v551_v44  ;;  %868 = vrcp.f32 %v452_v23  ;;  %v394_v44 = vpop.f32.mrf.mxu2 }
  0xef   : > { %870 = vrcp.f32 %v451_v24 }
  0xf4   : > { %v869_v27 = vpop.eup %868 }
  0xf5   : > { %v871_v28 = vpop.eup %870  ;;  %v462_v29 = vmul.f32 %v869_v27, %v859_v16  ;;  %v456_v31 = vmul.f32 %v869_v27, %v857_v15  ;;  %v468_v38 = vmul.f32 %v869_v27, %v865_v20 }
  0xf6   : > { %v455_v33 = vmul.f32 %v871_v28, %v863_v18  ;;  %v467_v36 = vmul.f32 %v871_v28, %v867_v22  ;;  %v461_v37 = vmul.f32 %v871_v28, %v861_v17 }
  0xf7   : > { %v464_v34 = vmul.f32 %v462_v29, %v388_v25  ;;  %v458_v35 = vmul.f32 %v456_v31, %v382_v30  ;;  %v470_v45 = vmul.f32 %v468_v38, %v394_v44 }
  0xf8   : > { %v457_v39 = vmul.f32 %v455_v33, %v379_v26  ;;  %v469_v42 = vmul.f32 %v467_v36, %v391_v32  ;;  %v463_v43 = vmul.f32 %v461_v37, %v385_v41 }
  0xf9   : > { %v466_v40 = vadd.f32 %v464_v34, %v458_v35 }
  0xfa   : > { %v465_v46 = vadd.f32 %v463_v43, %v457_v39 }
  0xfb   : > { %v472_v47 = vadd.f32 %v470_v45, %v466_v40 }
  0xfc   : > { %v471_v48 = vadd.f32 %v469_v42, %v465_v46 }
  0xfd   : > { %474 = vst [vmem:[%s326_s18 + $0x8] sm:$0xff] %v472_v47 }
  0xfe   : > { %473 = vst [vmem:[%s326_s18] sm:$0xff] %v471_v48 }
  0xff   : > { %929 = shalt.err (!%p926_p9)
}
 0x100   : > { %s1009_s17 = smov 128   ;;  %s1010_s18 = smov 256  }
 0x101   : > { %s1011_s14 = smov 8   ;;  %s319_s11 = scalar_lea.vmem [#allocation8], %s1139_s13 }
 0x102   : > { %796 = dma.vmem_to_hbm [thread:$0]  (%p1090_p6), %s617_s19, 256, %s619_s20, %s589_s26, %s1009_s17, %s1010_s18, %s1011_s14  }
 0x103   : > { %s1288_s28 = sshll.u32 %s1068_s25, 3  ;;  %s600_s15 = sshll.u32 %s319_s11, 4  ;;  %s601_s15 = int_to_ptr.vmem [resolvable:$true] %s600_s15 }
 0x104   : > { %s599_s10 = scalar_lea.hbm %s1272_s5, %s1288_s28  ;;  %s584_s0 = scalar_lea.sflag [#allocation3], %s1136_s7 }
 0x105   : > { %s602_s16 = sshll.u32 %s599_s10, 4  ;;  %s950_s19 = scalar_lea.hbm %s1272_s5, 32  ;;  %s603_s16 = int_to_ptr.hbm [resolvable:$true] %s602_s16 }
 0x106   : > { %s944_s1 = sshra.s32 %s603_s16, 4  ;;  %s945_s1 = int_to_ptr.hbm [resolvable:$true] %s944_s1 }
 0x107   : > { %s946_s2 = scalar_lea.hbm %s945_s1, 16  ;;  %p951_p0 = scmp.lt.s32.totalorder %s945_s1, %s1272_s5 }
 0x108   : > { %p947_p11 = scmp.ne.s32.totalorder %s945_s1, %s946_s2  ;;  %p952_p2 = scmp.lt.s32.totalorder %s950_s19, %s946_s2 }
 0x10a   : > { %p948_p12 = pnand %p947_p11, %p1090_p6  ;;  %p953_p3 = por %p952_p2, %p951_p0 }
 0x10c   : > { %p949_p13 = pneg %p948_p12 }
 0x10e   : > { %p954_p4 = pnand %p953_p3, %p949_p13 }
 0x163   : > { %v575_v49 = vpop.f32.mrf.mxu1 }
 0x164   : > { %581 = vst [vmem:[%s319_s11] sm:$0xff] %v575_v49 }
 0x16b   : > { %v578_v50 = vpop.f32.mrf.mxu1 }
 0x16c   : > { %582 = vst [vmem:[%s319_s11 + $0x8] sm:$0xff] %v578_v50 }
 0x16d   : > { %957 = shalt.err (!%p954_p4)
}
 0x16e   : > { %795 = dma.vmem_to_hbm [thread:$0]  (%p1090_p6), %s601_s15, 256, %s603_s16, %s584_s0, %s1009_s17, %s1010_s18, %s1011_s14  }
 0x16f PF: > { %s633_s7 = sand.u32 1, %s992_s21   ;;  %p807_p5 = pnand %p746_p1, %p1096_p10 }
 0x170   : > { %s634_s1 = scalar_lea.sflag [#allocation3], %s633_s7 }
 0x171   : > { %p808_p7 = pneg %p807_p5 }
 0x173   : > { %983 = dma.done.wait (%p808_p7), %s634_s1, 256  }
 0x174   : > { %985 = vsyncadd (%p808_p7), %s634_s1, 4294967040  ;;  %s644_s2 = scalar_lea.sflag [#allocation10], %s633_s7 }
 0x175   : > { %987 = dma.done.wait (%p808_p7), %s644_s2, 256  }
 0x176   : > { %989 = vsyncadd (%p808_p7), %s644_s2, 4294967040  ;;  %p22_p6 = scmp.ge.s32.totalorder %s1072_s27, 4   ;;  %s1289_s21 = smov %s996_s22 }
 0x177   : > { %s1290_s22 = smov %s1000_s23  ;;  %s1291_s23 = smov %s1084_s30 }
 0x178   : > { %s1292_s24 = smov %s1072_s27  ;;  %24 = sbr.rel (!%p22_p6) target bundleno = 11 (0xb), region = 144 }
 0x17d   :  { %650 = vsyncpa [#allocation3], 1 }
 0x17e   :  { %652 = vsyncpa [#allocation3 + $0x1], 1 }
 0x17f   :  { %653 = vsyncpa [#allocation10], 1 }
 0x180   :  { %655 = vsyncpa [#allocation10 + $0x1], 1 }
 0x181   :  { %656 = vsyncpa [#allocation4], 1 }
 0x182   :  { %658 = vsyncpa [#allocation4 + $0x1], 1 }
 0x183   :  { %659 = vsyncpa [#allocation6], 1 }

</bundles_post_ra>
